<compile_context>
chip_gen: v7x
topology: tpu7x:2x2x1
jax: 0.10.0
libtpu: 0.0.40
codegen_flags: <defaults>
</compile_context>

<pallas_src>
import jax
import jax.numpy as jnp
from jax.experimental import pallas as pl
from jax.experimental.pallas import tpu as pltpu


def _round_up(n, m):
    return (n + m - 1) // m * m


def _skip_linear_kernel(x_ref, w_ref, b_ref, o_ref):
    """Fused residual + linear:  o = x + x @ W + b   (one (tm, H_pad) row tile)."""
    x_bf = x_ref[...]                                   # (tm, H_pad) bf16
    y = jnp.dot(x_bf, w_ref[...],
                preferred_element_type=jnp.float32)     # MXU matmul, f32 accum
    out = x_bf.astype(jnp.float32) + y + b_ref[...]     # f32 residual + bias (VPU)
    o_ref[...] = out.astype(o_ref.dtype)


def skip_connection_linear(x, w, b, *, block_m=512,
                           compute_dtype=jnp.bfloat16,
                           vmem_budget_bytes=24 * 1024 * 1024):
    """x: (B, S, H); w: (H, H); b: (H,).  Returns x + x @ w + b, shape (B, S, H)."""
    B, S, H = x.shape
    M = B * S
    out_dtype = x.dtype
    cbytes = jnp.dtype(compute_dtype).itemsize
    obytes = jnp.dtype(out_dtype).itemsize

    # Lane dimension: pad hidden up to a multiple of 128 (unmasked stores).
    H_pad = _round_up(H, 128)

    # Row tile: as large as fits a conservative VMEM budget (double-buffered
    # bf16 input + double-buffered f32 output), sized for v7x's smaller VMEM.
    bytes_per_row = H_pad * 2 * (cbytes + obytes)
    tm = max(8, min(block_m, vmem_budget_bytes // max(bytes_per_row, 1)) // 8 * 8)
    tm = min(tm, _round_up(M, 8))
    M_pad = _round_up(M, tm)
    grid_m = M_pad // tm

    # Zero-pad (padded rows/cols contribute exactly 0) and cast HBM tensors.
    x2 = jnp.pad(x.reshape(M, H).astype(compute_dtype),
                 ((0, M_pad - M), (0, H_pad - H)))
    w2 = jnp.pad(w.astype(compute_dtype), ((0, H_pad - H), (0, H_pad - H)))
    b2 = jnp.pad(b.astype(jnp.float32), (0, H_pad - H)).reshape(1, H_pad)

    cost = pl.CostEstimate(
        flops=2 * M_pad * H_pad * H_pad,
        transcendentals=0,
        bytes_accessed=(M_pad * H_pad * cbytes          # x in
                        + H_pad * H_pad * cbytes        # W in
                        + H_pad * 4                     # b in
                        + M_pad * H_pad * obytes))      # out

    out2 = pl.pallas_call(
        _skip_linear_kernel,
        out_shape=jax.ShapeDtypeStruct((M_pad, H_pad), out_dtype),
        grid_spec=pltpu.PrefetchScalarGridSpec(
            num_scalar_prefetch=0,
            grid=(grid_m,),
            in_specs=[
                pl.BlockSpec((tm, H_pad), lambda i: (i, 0)),      # x row tile
                pl.BlockSpec((H_pad, H_pad), lambda i: (0, 0)),   # W, resident
                pl.BlockSpec((1, H_pad), lambda i: (0, 0)),       # b, resident
            ],
            out_specs=pl.BlockSpec((tm, H_pad), lambda i: (i, 0)),
        ),
        compiler_params=pltpu.CompilerParams(
            dimension_semantics=("parallel",)),   # v7x: shard rows over 2 TCs
        cost_estimate=cost,
    )(x2, w2, b2)

    return out2[:M, :H].reshape(B, S, H)


if __name__ == "__main__":
    # Small shapes consistent with the graph-layer usage of SkipConnection.
    B, S, H = 2, 8, 32

    key = jax.random.PRNGKey(0)
    kx, kw, kb = jax.random.split(key, 3)

    x = jax.random.normal(kx, (B, S, H), dtype=jnp.float32)
    # Deterministic Linear(H, H) parameters (synthetic, not a checkpoint).
    bound = 1.0 / (H ** 0.5)
    w = jax.random.uniform(kw, (H, H), minval=-bound, maxval=bound,
                           dtype=jnp.float32)
    b = jax.random.uniform(kb, (H,), minval=-bound, maxval=bound,
                           dtype=jnp.float32)

    out = skip_connection_linear(x, w, b)
    out = jax.block_until_ready(out)

    # Reference matching the kernel's bf16 HBM storage / f32 accumulation.
    x_bf = x.astype(jnp.bfloat16)
    w_bf = w.astype(jnp.bfloat16)
    ref_bf = (x_bf.astype(jnp.float32)
              + jnp.einsum("bsh,hk->bsk", x_bf, w_bf,
                           preferred_element_type=jnp.float32)
              + b)
    assert jnp.allclose(out, ref_bf, atol=1e-3, rtol=1e-3), \
        "mismatch vs bf16-matched reference"

    # Sanity check vs the pure-f32 PyTorch semantics (bf16 storage tolerance).
    ref_f32 = x + (jnp.einsum("bsh,hk->bsk", x, w) + b)
    assert jnp.allclose(out, ref_f32, atol=5e-2, rtol=5e-2), \
        "mismatch vs f32 reference"

    print("KERNEL_OK")
</pallas_src>

<mosaic_0001>
module attributes {stable_mosaic.version = 11 : i64} {
  func.func @_skip_linear_kernel(%arg0: i32, %arg1: memref<16x128xbf16, #tpu.memory_space<vmem>>, %arg2: memref<128x128xbf16, #tpu.memory_space<vmem>>, %arg3: memref<1x128xf32, #tpu.memory_space<vmem>>, %arg4: memref<16x128xf32, #tpu.memory_space<vmem>>) attributes {dimension_semantics = [#tpu.dimension_semantics<parallel>], iteration_bounds = array<i64: 1>, scalar_prefetch = 0 : i64, scratch_operands = 0 : i64, tpu.core_type = #tpu.core_type<tc>, window_params = [{transform_indices = @transform_0, window_bounds = array<i64: 16, 128>}, {pipeline_mode = #tpu.pipeline_mode<synchronous>, transform_indices = @transform_1, window_bounds = array<i64: 128, 128>}, {pipeline_mode = #tpu.pipeline_mode<synchronous>, transform_indices = @transform_2, window_bounds = array<i64: 1, 128>}, {transform_indices = @transform_3, window_bounds = array<i64: 16, 128>}]} {
    %c0 = arith.constant 0 : index
    %c0_0 = arith.constant 0 : index
    %0 = vector.load %arg1[%c0, %c0_0] : memref<16x128xbf16, #tpu.memory_space<vmem>>, vector<16x128xbf16>
    %c0_1 = arith.constant 0 : index
    %c0_2 = arith.constant 0 : index
    %1 = vector.load %arg2[%c0_1, %c0_2] : memref<128x128xbf16, #tpu.memory_space<vmem>>, vector<128x128xbf16>
    %cst = arith.constant dense<0.000000e+00> : vector<16x128xf32>
    %2 = tpu.matmul %0, %1, %cst {dimension_numbers = #tpu.dot_dimension_numbers<[1], [0], [0], [1], [0, 0, 1, 1], [], []>} : vector<16x128xbf16>, vector<128x128xbf16>, vector<16x128xf32> -> vector<16x128xf32>
    %3 = arith.extf %0 : vector<16x128xbf16> to vector<16x128xf32>
    %4 = arith.addf %3, %2 : vector<16x128xf32>
    %c0_3 = arith.constant 0 : index
    %c0_4 = arith.constant 0 : index
    %5 = vector.load %arg3[%c0_3, %c0_4] : memref<1x128xf32, #tpu.memory_space<vmem>>, vector<1x128xf32>
    %6 = vector.broadcast %5 : vector<1x128xf32> to vector<16x128xf32>
    %7 = arith.addf %4, %6 : vector<16x128xf32>
    %c0_5 = arith.constant 0 : index
    %c0_6 = arith.constant 0 : index
    %8 = vector.load %arg4[%c0_5, %c0_6] : memref<16x128xf32, #tpu.memory_space<vmem>>, vector<16x128xf32>
    tpu.vector_store %arg4[%c0_5, %c0_6], %7 {strides = array<i32>} : memref<16x128xf32, #tpu.memory_space<vmem>>, vector<16x128xf32>,
    return
  }
  func.func @transform_0(%arg0: i32) -> (i32, i32) {
    %c0_i32 = arith.constant 0 : i32
    %c0_i32_0 = arith.constant 0 : i32
    return %arg0, %c0_i32 : i32, i32
  }
  func.func @transform_1(%arg0: i32) -> (i32, i32) {
    %c0_i32 = arith.constant 0 : i32
    %c0_i32_0 = arith.constant 0 : i32
    %c0_i32_1 = arith.constant 0 : i32
    return %c0_i32, %c0_i32_0 : i32, i32
  }
  func.func @transform_2(%arg0: i32) -> (i32, i32) {
    %c0_i32 = arith.constant 0 : i32
    %c0_i32_0 = arith.constant 0 : i32
    %c0_i32_1 = arith.constant 0 : i32
    return %c0_i32, %c0_i32_0 : i32, i32
  }
  func.func @transform_3(%arg0: i32) -> (i32, i32) {
    %c0_i32 = arith.constant 0 : i32
    %c0_i32_0 = arith.constant 0 : i32
    return %arg0, %c0_i32 : i32, i32
  }
}

</mosaic_0001>

<bundles_post_ra>
// kernel: tpu_custom_call.1
= control target key start
LH: loop header
LB: loop body
LE: loop exit
PB: predicated region body
PF: predicated region fallthrough
CT: control target
= control target key end

     0   :  { %8 = vsyncpa [#allocation3], 0  ;;  %s388_s0 = inlined_call_operand.hbm [shape: bf16[16,128], index: 0, kind: input, shape index: {}]   ;;  %s389_s1 = inlined_call_operand.hbm [shape: bf16[128,128], index: 1, kind: input, shape index: {}]   ;;  %s390_s2 = inlined_call_operand.vmem [shape: f32[1,128], index: 2, kind: input, shape index: {}]   ;;  %s391_s3 = inlined_call_operand.hbm [shape: f32[16,128], index: 3, kind: output, shape index: {}]  }
   0x1   :  { %9 = vsyncpa [#allocation6], 0 }
   0x2   :  { %10 = vsyncpa [#allocation4], 0  ;;  %s320_s12 = smov [#allocation2]   ;;  %s248_s16 = scalar_lea.hbm %s388_s0, 128 }
   0x3   :  { %s16_s13 = sshll.u32 %s320_s12, 4  ;;  %p249_p0 = scmp.ne.s32.totalorder %s388_s0, %s248_s16  ;;  %s17_s13 = int_to_ptr.vmem [resolvable:$true] %s16_s13 }
   0x4   :  { %p252_p1 = scmp.lt.u32.totalorder %s248_s16, %s388_s0 }
   0x6   :  { %p254_p2 = pnand %p252_p1, %p249_p0 }
   0x8   :  { %257 = shalt.err (!%p254_p2)
}
   0x9   :  { %s258_s21 = scalar_lea.vmem %s17_s13, 128  ;;  %p263_p4 = scmp.lt.s32.totalorder %s17_s13, %s17_s13 }
   0xa   :  { %p259_p3 = scmp.ne.s32.totalorder %s17_s13, %s258_s21  ;;  %p264_p5 = scmp.lt.s32.totalorder %s258_s21, %s258_s21 }
   0xc   :  { %p265_p6 = por %p264_p5, %p263_p4 }
   0xe   :  { %p266_p7 = pnand %p265_p6, %p259_p3 }
  0x10   :  { %269 = shalt.err (!%p266_p7)
}
  0x11   :  { %s321_s22 = smov 64   ;;  %s322_s23 = smov 4  }
  0x12   :  { %22 = dma.hbm_to_vmem [thread:$0]  %s388_s0, 128, %s17_s13, [#allocation3], %s321_s22, %s321_s22, %s322_s23  }
  0x13   :  { %s323_s26 = smov [#allocation5]   ;;  %s270_s30 = scalar_lea.hbm %s389_s1, 1024 }
  0x14   :  { %s28_s27 = sshll.u32 %s323_s26, 4  ;;  %p271_p8 = scmp.ne.s32.totalorder %s389_s1, %s270_s30  ;;  %s29_s27 = int_to_ptr.vmem [resolvable:$true] %s28_s27 }
  0x15   :  { %p274_p9 = scmp.lt.u32.totalorder %s270_s30, %s389_s1 }
  0x17   :  { %p276_p10 = pnand %p274_p9, %p271_p8 }
  0x19   :  { %279 = shalt.err (!%p276_p10)
}
  0x1a   :  { %s280_s8 = scalar_lea.vmem %s29_s27, 1024  ;;  %p285_p12 = scmp.lt.s32.totalorder %s29_s27, %s29_s27 }
  0x1b   :  { %p281_p11 = scmp.ne.s32.totalorder %s29_s27, %s280_s8  ;;  %p286_p13 = scmp.lt.s32.totalorder %s280_s8, %s280_s8 }
  0x1d   :  { %p287_p0 = por %p286_p13, %p285_p12 }
  0x1f   :  { %p288_p1 = pnand %p287_p0, %p281_p11 }
  0x21   :  { %291 = shalt.err (!%p288_p1)
}
  0x22   :  { %34 = dma.hbm_to_vmem [thread:$0]  %s389_s1, 1024, %s29_s27, [#allocation6], %s321_s22, %s321_s22, %s322_s23  }
  0x23   :  { %314 = dma.done.wait [#allocation3], 128  }
  0x24   :  { %315 = vsyncadd [#allocation3], 4294967168 }
  0x25   :  { %316 = dma.done.wait [#allocation6], 1024  }
  0x26   :  { %317 = vsyncadd [#allocation6], 4294966272  ;;  %v324_v0 = vmov 0.0   ;;  %vm325_vm0 = vmmov 0   ;;  %v238_v1 = vld [vmem:[#allocation5] sm:$0xff]   ;;  %v239_v2 = vld [vmem:[#allocation5 + $0x8] sm:$0xff]  }
  0x27   :  { %209 = vmatprep.subr.bf16.mxu0 %v324_v0  ;;  %225 = vmatprep.mubr.msk.bf16.mxu0 %vm325_vm0, %v324_v0  ;;  %v240_v3 = vld [vmem:[#allocation5 + $0x10] sm:$0xff]   ;;  %v241_v4 = vld [vmem:[#allocation5 + $0x18] sm:$0xff]   ;;  %v242_v5 = vld [vmem:[#allocation5 + $0x20] sm:$0xff]   ;;  %s326_s11 = smov [#allocation7]  }
  0x28   :  { %210 = vmatpush3.bf16.msra.mxu0 %v238_v1  ;;  %v243_v6 = vld [vmem:[#allocation5 + $0x28] sm:$0xff]   ;;  %v244_v7 = vld [vmem:[#allocation5 + $0x30] sm:$0xff]   ;;  %v245_v8 = vld [vmem:[#allocation5 + $0x38] sm:$0xff]   ;;  %s177_s12 = sshll.u32 %s326_s11, 4  ;;  %s178_s12 = int_to_ptr.vmem [resolvable:$true] %s177_s12 }
  0x29   :  { %211 = vmatprep.subr.bf16.mxu0 %v324_v0  ;;  %v44_v9 = vld [vmem:[#allocation2] sm:$0xff]   ;;  %s292_s13 = scalar_lea.vmem %s178_s12, 256  ;;  %p297_p3 = scmp.lt.s32.totalorder %s178_s12, %s178_s12 }
  0x2a   :  { %v157_v10 = vunpack.c.l.bf16 %v44_v9  ;;  %v158_v11 = vunpack.c.h.bf16 %v44_v9  ;;  %v199_v13 = vld [vmem:[%s390_s2] ss:$0 sm:$0xff]  ;;  %p293_p2 = scmp.ne.s32.totalorder %s178_s12, %s292_s13  ;;  %p298_p4 = scmp.lt.s32.totalorder %s292_s13, %s292_s13 }
  0x2c   :  { %212 = vmatpush3.bf16.msra.mxu0 %v239_v2  ;;  %p299_p5 = por %p298_p4, %p297_p3 }
  0x2d   :  { %213 = vmatprep.subr.bf16.mxu0 %v324_v0 }
  0x2e   :  { %p300_p6 = pnand %p299_p5, %p293_p2 }
  0x30   :  { %214 = vmatpush3.bf16.msra.mxu0 %v240_v3 }
  0x31   :  { %215 = vmatprep.subr.bf16.mxu0 %v324_v0 }
  0x34   :  { %216 = vmatpush3.bf16.msra.mxu0 %v241_v4 }
  0x35   :  { %217 = vmatprep.subr.bf16.mxu0 %v324_v0 }
  0x38   :  { %218 = vmatpush3.bf16.msra.mxu0 %v242_v5 }
  0x39   :  { %219 = vmatprep.subr.bf16.mxu0 %v324_v0 }
  0x3c   :  { %220 = vmatpush3.bf16.msra.mxu0 %v243_v6 }
  0x3d   :  { %221 = vmatprep.subr.bf16.mxu0 %v324_v0 }
  0x40   :  { %222 = vmatpush3.bf16.msra.mxu0 %v244_v7 }
  0x41   :  { %223 = vmatprep.subr.bf16.mxu0 %v324_v0 }
  0x44   :  { %224 = vmatpush3.bf16.msra.mxu0 %v245_v8 }
  0x47   :  { %226 = vmatmul.mubr.bf16.vlgmr.msra.gmra.mrb[0].mxu0 %v44_v9 }
 0x11a   :  { %v150_v12 = vpop.f32.mrb[0].mxu0 }
 0x11b   :  { %v159_v14 = vadd.f32 %v157_v10, %v150_v12  ;;  %v227_v15 = vpop.f32.mrb[1].mxu0 }
 0x11c   :  { %v153_v16 = vpop.f32.mrb[2].mxu0 }
 0x11d   :  { %v168_v17 = vadd.f32 %v199_v13, %v159_v14  ;;  %v160_v18 = vadd.f32 %v158_v11, %v153_v16  ;;  %v228_v19 = vpop.f32.mrb[3].mxu0 }
 0x11f   :  { %170 = vst [vmem:[#allocation7] sm:$0xff] %v168_v17  ;;  %v169_v20 = vadd.f32 %v199_v13, %v160_v18 }
 0x121   :  { %171 = vst [vmem:[#allocation7 + $0x8] sm:$0xff] %v169_v20 }
 0x122   :  { %303 = shalt.err (!%p300_p6)
}
 0x123   :  { %s304_s15 = scalar_lea.hbm %s391_s3, 256 }
 0x124   :  { %p305_p7 = scmp.ne.s32.totalorder %s391_s3, %s304_s15  ;;  %p308_p8 = scmp.lt.u32.totalorder %s304_s15, %s391_s3 }
 0x126   :  { %p310_p9 = pnand %p308_p8, %p305_p7 }
 0x128   :  { %313 = shalt.err (!%p310_p9)
}
 0x129   :  { %s327_s20 = smov 128   ;;  %s328_s21 = smov 8  }
 0x12a   :  { %183 = dma.vmem_to_hbm [thread:$0]  %s178_s12, 256, %s391_s3, [#allocation4], %s327_s20, %s327_s20, %s328_s21  }
 0x12b   :  { %318 = dma.done.wait [#allocation4], 256  }
 0x12c   :  { %319 = vsyncadd [#allocation4], 4294967040 }
 0x12d   :  { %187 = vsyncpa [#allocation3], 1 }
 0x12e   :  { %188 = vsyncpa [#allocation6], 1 }
 0x12f   :  { %189 = vsyncpa [#allocation4], 1 }

</bundles_post_ra>
